<compile_context>
chip_gen: v7x
topology: tpu7x:2x2x1
jax: 0.10.0
libtpu: 0.0.40
codegen_flags: <defaults>
</compile_context>

<pallas_src>
import functools
import math

import jax
import jax.numpy as jnp
from jax.experimental import pallas as pl
from jax.experimental.pallas import tpu as pltpu

LANE = 128
SUBLANE = 8


def _round_up(x, m):
    return (x + m - 1) // m * m


def _vmem_footprint_bytes(block_b, seq_len, hidden, ptm, pp):
    """Rough per-program VMEM footprint estimate (activations + intermediates)."""
    rows = block_b * seq_len
    act_in = 2 * rows * (hidden + ptm) * 4            # f32 inputs, double-buffered
    act_out = 2 * rows * pp * 4                       # f32 output, double-buffered
    proj = rows * 3 * pp * (4 + 2)                    # q/kv f32 + q3/k3/v3 bf16
    scores = block_b * seq_len * seq_len * (4 + 4 + 2)  # scores f32 + exp f32 + bf16 attn
    return act_in + act_out + proj + scores


def _pick_block_b(batch, seq_len, hidden, ptm, pp, *,
                  target_rows=512, vmem_budget=12 * 1024 * 1024):
    """Largest divisor of `batch` presenting <= target_rows rows per projection
    matmul while staying inside a conservative VMEM budget (safe under the
    v5e 16 MiB default scoped limit).  No ">=2 programs" preference: on the
    single-TensorCore v5e/v6e splitting only adds per-grid-step overhead."""
    divisors = [d for d in range(1, batch + 1) if batch % d == 0]
    fitting = [d for d in divisors
               if d * seq_len <= target_rows
               and _vmem_footprint_bytes(d, seq_len, hidden, ptm, pp) <= vmem_budget]
    return max(fitting) if fitting else 1


def _ptm_attention_kernel(inv_scale, flatten_rows,
                          seq_ref, ptm_ref,
                          wq_ref, bq_ref,
                          wkv_ref, bkv_ref,
                          out_ref):
    # seq_ref: (TB, S, H) f32, ptm_ref: (TB, S, P) f32, out_ref: (TB, S, Pp)
    tb, s, h = seq_ref.shape
    p = ptm_ref.shape[-1]
    pp = out_ref.shape[-1]

    # In-kernel bf16 cast of the activations (hides under the MXU; avoids a
    # separate XLA pad/cast pass over HBM in the wrapper).
    seq = seq_ref[...].astype(jnp.bfloat16)
    ptm = ptm_ref[...].astype(jnp.bfloat16)

    if flatten_rows:
        # S % 8 == 0: merging (TB, S) keeps the (8,128) tiling intact.
        seq2 = seq.reshape(tb * s, h)
        ptm2 = ptm.reshape(tb * s, p)
        q = jnp.dot(seq2, wq_ref[...],
                    preferred_element_type=jnp.float32) + bq_ref[...]
        kv = jnp.dot(ptm2, wkv_ref[...],
                     preferred_element_type=jnp.float32) + bkv_ref[...]
        # Fold 1/sqrt(P) into Q; slice-and-cast kv immediately (keeps the big
        # f32 kv tile from staying live alongside separate f32 k/v copies).
        q3 = (q * inv_scale).astype(jnp.bfloat16).reshape(tb, s, pp)
        k3 = kv[:, :pp].astype(jnp.bfloat16).reshape(tb, s, pp)
        v3 = kv[:, pp:].astype(jnp.bfloat16).reshape(tb, s, pp)
    else:
        # Fallback without the row-merge (avoids a relayout copy when S%8!=0).
        q = jnp.einsum("bsh,hd->bsd", seq, wq_ref[...],
                       preferred_element_type=jnp.float32) + bq_ref[...]
        kv = jnp.einsum("bsp,pd->bsd", ptm, wkv_ref[...],
                        preferred_element_type=jnp.float32) + bkv_ref[...]
        q3 = (q * inv_scale).astype(jnp.bfloat16)
        k3 = kv[..., :pp].astype(jnp.bfloat16)
        v3 = kv[..., pp:].astype(jnp.bfloat16)

    # Scores: contract last dims (the K "transpose" is absorbed by the MXU).
    scores = jnp.einsum("bqd,bkd->bqk", q3, k3,
                        preferred_element_type=jnp.float32)       # (TB, S, S)

    # Numerically stable softmax over keys; the 1/rowsum normalization is
    # applied AFTER the PV matmul (row-wise scale commutes with V matmul),
    # turning an (S,S) VPU multiply into an (S,Pp) one.
    scores = scores - jnp.max(scores, axis=-1, keepdims=True)
    e = jnp.exp(scores)
    denom = jnp.sum(e, axis=-1, keepdims=True)                    # (TB, S, 1)

    ctx = jnp.einsum("bqk,bkd->bqd", e.astype(jnp.bfloat16), v3,
                     preferred_element_type=jnp.float32)          # (TB, S, Pp)
    out_ref[...] = (ctx * pl.reciprocal(denom, approx=True)).astype(out_ref.dtype)


def prepare_params(params, *, weight_dtype=jnp.bfloat16):
    """One-time weight preparation (call once at init, not per forward):
    pad output feature dims to a lane multiple, fuse [Wk | Wv], cast to bf16.
    Weights are stored (in_features, out_features): y = x @ W + b."""
    wq, wk, wv = params["wq"], params["wk"], params["wv"]
    bq = jnp.asarray(params["bq"]).reshape(1, -1)
    bk = jnp.asarray(params["bk"]).reshape(1, -1)
    bv = jnp.asarray(params["bv"]).reshape(1, -1)

    H, P = wq.shape
    pp = _round_up(P, LANE)
    pad_out = ((0, 0), (0, pp - P))

    return {
        "wq": jnp.pad(wq, pad_out).astype(weight_dtype),                 # (H, Pp)
        "bq": jnp.pad(bq, pad_out).astype(jnp.float32),                  # (1, Pp)
        "wkv": jnp.concatenate([jnp.pad(wk, pad_out), jnp.pad(wv, pad_out)],
                               axis=1).astype(weight_dtype),             # (P, 2Pp)
        "bkv": jnp.concatenate([jnp.pad(bk, pad_out), jnp.pad(bv, pad_out)],
                               axis=1).astype(jnp.float32),              # (1, 2Pp)
        "hidden_dim": H,
        "ptm_dim": P,
    }


def ptm_attention(ptm_features, seq_features, prepared, *,
                  block_b=None, vmem_limit_bytes=None,
                  out_dtype=jnp.float32):
    """Pallas implementation of PTMAttentionLayer.forward.

    ptm_features: (B, S, P) float32
    seq_features: (B, S, H) float32
    prepared:     output of prepare_params(...)
    returns:      (B, S, P) `out_dtype` (float32 by default to match the
                  reference; pass bf16 to halve writeback DMA if the consumer
                  tolerates it)
    """
    B, S, P = ptm_features.shape
    H = seq_features.shape[-1]
    assert prepared["ptm_dim"] == P and prepared["hidden_dim"] == H
    pp = prepared["wq"].shape[-1]
    inv_scale = 1.0 / math.sqrt(float(P))

    if block_b is None:
        block_b = _pick_block_b(B, S, H, P, pp)
    assert B % block_b == 0, "block_b must divide the batch size"
    grid_b = B // block_b

    # If the caller asked for a block bigger than the conservative default
    # budget, raise the scoped-VMEM limit (the v5e default is only 16 MiB).
    if vmem_limit_bytes is None:
        est = _vmem_footprint_bytes(block_b, S, H, P, pp)
        if est > 12 * 1024 * 1024:
            vmem_limit_bytes = min(int(est * 2), 48 * 1024 * 1024)

    flatten_rows = (S % SUBLANE == 0)
    kernel = functools.partial(_ptm_attention_kernel, inv_scale, flatten_rows)

    cp_kwargs = dict(dimension_semantics=("parallel",))
    if vmem_limit_bytes is not None:
        cp_kwargs["vmem_limit_bytes"] = vmem_limit_bytes

    out = pl.pallas_call(
        kernel,
        out_shape=jax.ShapeDtypeStruct((B, S, pp), out_dtype),
        grid_spec=pltpu.PrefetchScalarGridSpec(
            num_scalar_prefetch=0,
            grid=(grid_b,),
            in_specs=[
                # Activations stay f32 / unpadded; full-dim blocks are legal.
                pl.BlockSpec((block_b, S, H), lambda b: (b, 0, 0)),   # seq
                pl.BlockSpec((block_b, S, P), lambda b: (b, 0, 0)),   # ptm
                # Grid-invariant weights: constant block index => Pallas skips
                # re-DMA across grid steps.
                pl.BlockSpec((H, pp), lambda b: (0, 0)),              # Wq
                pl.BlockSpec((1, pp), lambda b: (0, 0)),              # bq
                pl.BlockSpec((P, 2 * pp), lambda b: (0, 0)),          # [Wk|Wv]
                pl.BlockSpec((1, 2 * pp), lambda b: (0, 0)),          # [bk|bv]
            ],
            out_specs=pl.BlockSpec((block_b, S, pp), lambda b: (b, 0, 0)),
        ),
        compiler_params=pltpu.CompilerParams(**cp_kwargs),
    )(seq_features, ptm_features,
      prepared["wq"], prepared["bq"], prepared["wkv"], prepared["bkv"])

    if pp != P:
        out = out[..., :P]
    return out


def _reference(ptm_features, seq_features, params):
    """Pure-JAX reference matching the PyTorch forward (f32 throughout)."""
    P = ptm_features.shape[-1]
    scale = jnp.sqrt(jnp.float32(P))
    q = seq_features @ params["wq"] + params["bq"]
    k = ptm_features @ params["wk"] + params["bk"]
    v = ptm_features @ params["wv"] + params["bv"]
    scores = jnp.einsum("bqd,bkd->bqk", q, k) / scale
    attn = jax.nn.softmax(scores, axis=-1)
    return jnp.einsum("bqk,bkd->bqd", attn, v)


def init_params(key, ptm_dim, hidden_dim):
    """torch.nn.Linear-style init; weights stored (in_features, out_features)."""
    ks = jax.random.split(key, 6)
    bq_bound = 1.0 / jnp.sqrt(jnp.float32(hidden_dim))
    bk_bound = 1.0 / jnp.sqrt(jnp.float32(ptm_dim))
    return {
        "wq": jax.random.uniform(ks[0], (hidden_dim, ptm_dim), jnp.float32,
                                 -bq_bound, bq_bound),
        "bq": jax.random.uniform(ks[1], (1, ptm_dim), jnp.float32,
                                 -bq_bound, bq_bound),
        "wk": jax.random.uniform(ks[2], (ptm_dim, ptm_dim), jnp.float32,
                                 -bk_bound, bk_bound),
        "bk": jax.random.uniform(ks[3], (1, ptm_dim), jnp.float32,
                                 -bk_bound, bk_bound),
        "wv": jax.random.uniform(ks[4], (ptm_dim, ptm_dim), jnp.float32,
                                 -bk_bound, bk_bound),
        "bv": jax.random.uniform(ks[5], (1, ptm_dim), jnp.float32,
                                 -bk_bound, bk_bound),
    }


if __name__ == "__main__":
    key = jax.random.PRNGKey(0)
    k_ptm, k_seq, k_par = jax.random.split(key, 3)

    batch, seq_len, ptm_dim, hidden_dim = 4, 8, 32, 32

    ptm_features = jax.random.normal(k_ptm, (batch, seq_len, ptm_dim), jnp.float32)
    seq_features = jax.random.normal(k_seq, (batch, seq_len, hidden_dim), jnp.float32)
    params = init_params(k_par, ptm_dim, hidden_dim)

    # One-time weight preparation (hoisted out of the per-step forward).
    prepared = prepare_params(params)

    out = ptm_attention(ptm_features, seq_features, prepared)
    out = jax.block_until_ready(out)

    ref = _reference(ptm_features, seq_features, params)
    assert out.shape == (batch, seq_len, ptm_dim)
    # bf16 MXU operands + approx reciprocal => relaxed tolerance vs the f32 ref.
    assert jnp.allclose(out, ref, atol=5e-2, rtol=5e-2), (
        f"mismatch vs reference (max abs err = {jnp.max(jnp.abs(out - ref)):.4e})")

    print("KERNEL_OK")
</pallas_src>

<mosaic_0001>
module attributes {stable_mosaic.version = 11 : i64} {
  func.func @_ptm_attention_kernel(%arg0: i32, %arg1: memref<4x8x32xf32, #tpu.memory_space<vmem>>, %arg2: memref<4x8x32xf32, #tpu.memory_space<vmem>>, %arg3: memref<32x128xbf16, #tpu.memory_space<vmem>>, %arg4: memref<1x128xf32, #tpu.memory_space<vmem>>, %arg5: memref<32x256xbf16, #tpu.memory_space<vmem>>, %arg6: memref<1x256xf32, #tpu.memory_space<vmem>>, %arg7: memref<4x8x128xf32, #tpu.memory_space<vmem>>) attributes {dimension_semantics = [#tpu.dimension_semantics<parallel>], iteration_bounds = array<i64: 1>, scalar_prefetch = 0 : i64, scratch_operands = 0 : i64, tpu.core_type = #tpu.core_type<tc>, window_params = [{transform_indices = @transform_0, window_bounds = array<i64: 4, 8, 32>}, {transform_indices = @transform_1, window_bounds = array<i64: 4, 8, 32>}, {pipeline_mode = #tpu.pipeline_mode<synchronous>, transform_indices = @transform_2, window_bounds = array<i64: 32, 128>}, {pipeline_mode = #tpu.pipeline_mode<synchronous>, transform_indices = @transform_3, window_bounds = array<i64: 1, 128>}, {pipeline_mode = #tpu.pipeline_mode<synchronous>, transform_indices = @transform_4, window_bounds = array<i64: 32, 256>}, {pipeline_mode = #tpu.pipeline_mode<synchronous>, transform_indices = @transform_5, window_bounds = array<i64: 1, 256>}, {transform_indices = @transform_6, window_bounds = array<i64: 4, 8, 128>}]} {
    %c0 = arith.constant 0 : index
    %c0_0 = arith.constant 0 : index
    %c0_1 = arith.constant 0 : index
    %0 = vector.load %arg1[%c0, %c0_0, %c0_1] : memref<4x8x32xf32, #tpu.memory_space<vmem>>, vector<4x8x32xf32>
    %1 = arith.truncf %0 : vector<4x8x32xf32> to vector<4x8x32xbf16>
    %c0_2 = arith.constant 0 : index
    %c0_3 = arith.constant 0 : index
    %c0_4 = arith.constant 0 : index
    %2 = vector.load %arg2[%c0_2, %c0_3, %c0_4] : memref<4x8x32xf32, #tpu.memory_space<vmem>>, vector<4x8x32xf32>
    %3 = arith.truncf %2 : vector<4x8x32xf32> to vector<4x8x32xbf16>
    %4 = vector.shape_cast %1 : vector<4x8x32xbf16> to vector<32x32xbf16>
    %5 = vector.shape_cast %3 : vector<4x8x32xbf16> to vector<32x32xbf16>
    %c0_5 = arith.constant 0 : index
    %c0_6 = arith.constant 0 : index
    %6 = vector.load %arg3[%c0_5, %c0_6] : memref<32x128xbf16, #tpu.memory_space<vmem>>, vector<32x128xbf16>
    %cst = arith.constant dense<0.000000e+00> : vector<32x128xf32>
    %7 = tpu.matmul %4, %6, %cst {dimension_numbers = #tpu.dot_dimension_numbers<[1], [0], [0], [1], [0, 0, 1, 1], [], []>} : vector<32x32xbf16>, vector<32x128xbf16>, vector<32x128xf32> -> vector<32x128xf32>
    %c0_7 = arith.constant 0 : index
    %c0_8 = arith.constant 0 : index
    %8 = vector.load %arg4[%c0_7, %c0_8] : memref<1x128xf32, #tpu.memory_space<vmem>>, vector<1x128xf32>
    %9 = vector.broadcast %8 : vector<1x128xf32> to vector<32x128xf32>
    %10 = arith.addf %7, %9 : vector<32x128xf32>
    %c0_9 = arith.constant 0 : index
    %c0_10 = arith.constant 0 : index
    %11 = vector.load %arg5[%c0_9, %c0_10] : memref<32x256xbf16, #tpu.memory_space<vmem>>, vector<32x256xbf16>
    %cst_11 = arith.constant dense<0.000000e+00> : vector<32x256xf32>
    %12 = tpu.matmul %5, %11, %cst_11 {dimension_numbers = #tpu.dot_dimension_numbers<[1], [0], [0], [1], [0, 0, 1, 1], [], []>} : vector<32x32xbf16>, vector<32x256xbf16>, vector<32x256xf32> -> vector<32x256xf32>
    %c0_12 = arith.constant 0 : index
    %c0_13 = arith.constant 0 : index
    %13 = vector.load %arg6[%c0_12, %c0_13] : memref<1x256xf32, #tpu.memory_space<vmem>>, vector<1x256xf32>
    %14 = vector.broadcast %13 : vector<1x256xf32> to vector<32x256xf32>
    %15 = arith.addf %12, %14 : vector<32x256xf32>
    %cst_14 = arith.constant 0.176776692 : f32
    %16 = vector.broadcast %cst_14 : f32 to vector<32x128xf32>
    %17 = arith.mulf %10, %16 : vector<32x128xf32>
    %18 = arith.truncf %17 : vector<32x128xf32> to vector<32x128xbf16>
    %19 = vector.shape_cast %18 : vector<32x128xbf16> to vector<4x8x128xbf16>
    %20 = vector.extract_strided_slice %15 {offsets = [0, 0], sizes = [32, 128], strides = [1, 1]} : vector<32x256xf32> to vector<32x128xf32>
    %21 = arith.truncf %20 : vector<32x128xf32> to vector<32x128xbf16>
    %22 = vector.shape_cast %21 : vector<32x128xbf16> to vector<4x8x128xbf16>
    %23 = vector.extract_strided_slice %15 {offsets = [0, 128], sizes = [32, 128], strides = [1, 1]} : vector<32x256xf32> to vector<32x128xf32>
    %24 = arith.truncf %23 : vector<32x128xf32> to vector<32x128xbf16>
    %25 = vector.shape_cast %24 : vector<32x128xbf16> to vector<4x8x128xbf16>
    "tpu.trace_start"() <{level = 10 : i32, message = "bqd,bkd->bqk"}> : () -> ()
    %cst_15 = arith.constant dense<0.000000e+00> : vector<4x8x8xf32>
    %26 = tpu.matmul %19, %22, %cst_15 {dimension_numbers = #tpu.dot_dimension_numbers<[2], [2], [1], [1], [0, 0, 0, 1, 1, 1], [0], [0]>} : vector<4x8x128xbf16>, vector<4x8x128xbf16>, vector<4x8x8xf32> -> vector<4x8x8xf32>
    "tpu.trace_stop"() : () -> ()
    %cst_16 = arith.constant dense<0xFF800000> : vector<4x8xf32>
    %27 = vector.multi_reduction <maximumf>, %26, %cst_16 [2] : vector<4x8x8xf32> to vector<4x8xf32>
    %28 = vector.shape_cast %27 : vector<4x8xf32> to vector<4x8x1xf32>
    %29 = vector.broadcast %28 : vector<4x8x1xf32> to vector<4x8x8xf32>
    %30 = arith.subf %26, %29 : vector<4x8x8xf32>
    %31 = math.exp %30 : vector<4x8x8xf32>
    %cst_17 = arith.constant dense<0.000000e+00> : vector<4x8xf32>
    %32 = vector.multi_reduction <add>, %31, %cst_17 [2] : vector<4x8x8xf32> to vector<4x8xf32>
    %33 = vector.shape_cast %32 : vector<4x8xf32> to vector<4x8x1xf32>
    %34 = arith.truncf %31 : vector<4x8x8xf32> to vector<4x8x8xbf16>
    "tpu.trace_start"() <{level = 10 : i32, message = "bqk,bkd->bqd"}> : () -> ()
    %cst_18 = arith.constant dense<0.000000e+00> : vector<4x8x128xf32>
    %35 = tpu.matmul %34, %25, %cst_18 {dimension_numbers = #tpu.dot_dimension_numbers<[2], [1], [1], [2], [0, 0, 0, 1, 1, 2], [0], [0]>} : vector<4x8x8xbf16>, vector<4x8x128xbf16>, vector<4x8x128xf32> -> vector<4x8x128xf32>
    "tpu.trace_stop"() : () -> ()
    %36 = tpu.reciprocal %33 {approx = true} : vector<4x8x1xf32> -> vector<4x8x1xf32>
    %37 = vector.broadcast %36 : vector<4x8x1xf32> to vector<4x8x128xf32>
    %38 = arith.mulf %35, %37 : vector<4x8x128xf32>
    %c0_19 = arith.constant 0 : index
    %c0_20 = arith.constant 0 : index
    %c0_21 = arith.constant 0 : index
    %39 = vector.load %arg7[%c0_19, %c0_20, %c0_21] : memref<4x8x128xf32, #tpu.memory_space<vmem>>, vector<4x8x128xf32>
    tpu.vector_store %arg7[%c0_19, %c0_20, %c0_21], %38 {strides = array<i32>} : memref<4x8x128xf32, #tpu.memory_space<vmem>>, vector<4x8x128xf32>,
    return
  }
  func.func @transform_0(%arg0: i32) -> (i32, i32, i32) {
    %c0_i32 = arith.constant 0 : i32
    %c0_i32_0 = arith.constant 0 : i32
    %c0_i32_1 = arith.constant 0 : i32
    return %arg0, %c0_i32, %c0_i32_0 : i32, i32, i32
  }
  func.func @transform_1(%arg0: i32) -> (i32, i32, i32) {
    %c0_i32 = arith.constant 0 : i32
    %c0_i32_0 = arith.constant 0 : i32
    %c0_i32_1 = arith.constant 0 : i32
    return %arg0, %c0_i32, %c0_i32_0 : i32, i32, i32
  }
  func.func @transform_2(%arg0: i32) -> (i32, i32) {
    %c0_i32 = arith.constant 0 : i32
    %c0_i32_0 = arith.constant 0 : i32
    %c0_i32_1 = arith.constant 0 : i32
    return %c0_i32, %c0_i32_0 : i32, i32
  }
  func.func @transform_3(%arg0: i32) -> (i32, i32) {
    %c0_i32 = arith.constant 0 : i32
    %c0_i32_0 = arith.constant 0 : i32
    %c0_i32_1 = arith.constant 0 : i32
    return %c0_i32, %c0_i32_0 : i32, i32
  }
  func.func @transform_4(%arg0: i32) -> (i32, i32) {
    %c0_i32 = arith.constant 0 : i32
    %c0_i32_0 = arith.constant 0 : i32
    %c0_i32_1 = arith.constant 0 : i32
    return %c0_i32, %c0_i32_0 : i32, i32
  }
  func.func @transform_5(%arg0: i32) -> (i32, i32) {
    %c0_i32 = arith.constant 0 : i32
    %c0_i32_0 = arith.constant 0 : i32
    %c0_i32_1 = arith.constant 0 : i32
    return %c0_i32, %c0_i32_0 : i32, i32
  }
  func.func @transform_6(%arg0: i32) -> (i32, i32, i32) {
    %c0_i32 = arith.constant 0 : i32
    %c0_i32_0 = arith.constant 0 : i32
    %c0_i32_1 = arith.constant 0 : i32
    return %arg0, %c0_i32, %c0_i32_0 : i32, i32, i32
  }
}

</mosaic_0001>

<bundles_post_ra>
// kernel: tpu_custom_call.1
= control target key start
LH: loop header
LB: loop body
LE: loop exit
PB: predicated region body
PF: predicated region fallthrough
CT: control target
= control target key end

     0   :  { %11 = vsyncpa [#allocation3], 0  ;;  %s1214_s0 = inlined_call_operand.hbm [shape: f32[4,8,32], index: 0, kind: input, shape index: {}]   ;;  %s1215_s1 = inlined_call_operand.hbm [shape: f32[4,8,32], index: 1, kind: input, shape index: {}]   ;;  %s1216_s2 = inlined_call_operand.hbm [shape: bf16[32,128], index: 2, kind: input, shape index: {}]   ;;  %s1217_s3 = inlined_call_operand.vmem [shape: f32[1,128], index: 3, kind: input, shape index: {}]   ;;  %s1218_s4 = inlined_call_operand.hbm [shape: bf16[32,256], index: 4, kind: input, shape index: {}]   ;;  %s1219_s5 = inlined_call_operand.vmem [shape: f32[1,256], index: 5, kind: input, shape index: {}]   ;;  %s1220_s6 = inlined_call_operand.hbm [shape: f32[4,8,128], index: 6, kind: output, shape index: {}]  }
   0x1   :  { %12 = vsyncpa [#allocation6], 0 }
   0x2   :  { %13 = vsyncpa [#allocation9], 0 }
   0x3   :  { %14 = vsyncpa [#allocation4], 0  ;;  %s1032_s21 = smov [#allocation5]   ;;  %s1033_s23 = smov [#allocation2]  }
   0x4   :  { %s32_s22 = sshll.u32 %s1032_s21, 4  ;;  %s20_s24 = sshll.u32 %s1033_s23, 4  ;;  %s33_s22 = int_to_ptr.vmem [resolvable:$true] %s32_s22  ;;  %s1079_s24 = int_to_ptr.vmem [resolvable:$true] %s20_s24 }
   0x5   :  { %s914_s27 = scalar_lea.hbm %s1215_s1, 512 }
   0x6   :  { %p915_p0 = scmp.ne.s32.totalorder %s1215_s1, %s914_s27  ;;  %p918_p1 = scmp.lt.u32.totalorder %s914_s27, %s1215_s1 }
   0x8   :  { %p920_p2 = pnand %p918_p1, %p915_p0 }
   0xa   :  { %923 = shalt.err (!%p920_p2)
}
   0xb   :  { %s924_s8 = scalar_lea.vmem %s33_s22, 512  ;;  %p929_p4 = scmp.lt.s32.totalorder %s33_s22, %s33_s22 }
   0xc   :  { %p925_p3 = scmp.ne.s32.totalorder %s33_s22, %s924_s8  ;;  %p930_p5 = scmp.lt.s32.totalorder %s924_s8, %s924_s8 }
   0xe   :  { %p931_p6 = por %p930_p5, %p929_p4 }
  0x10   :  { %p932_p7 = pnand %p931_p6, %p925_p3 }
  0x12   :  { %935 = shalt.err (!%p932_p7)
}
  0x13   :  { %s1034_s9 = smov 128   ;;  %s1035_s10 = smov 8  }
  0x14   :  { %38 = dma.hbm_to_vmem [thread:$0]  %s1215_s1, 512, %s33_s22, [#allocation6], %s1034_s9, %s1034_s9, %s1035_s10  }
  0x15   :  { %s936_s15 = scalar_lea.hbm %s1214_s0, 512 }
  0x16   :  { %p937_p8 = scmp.ne.s32.totalorder %s1214_s0, %s936_s15  ;;  %p940_p9 = scmp.lt.u32.totalorder %s936_s15, %s1214_s0 }
  0x18   :  { %p942_p10 = pnand %p940_p9, %p937_p8 }
  0x1a   :  { %945 = shalt.err (!%p942_p10)
}
  0x1b   :  { %s946_s20 = scalar_lea.vmem %s1079_s24, 512  ;;  %p951_p12 = scmp.lt.s32.totalorder %s1079_s24, %s1079_s24 }
  0x1c   :  { %p947_p11 = scmp.ne.s32.totalorder %s1079_s24, %s946_s20  ;;  %p952_p13 = scmp.lt.s32.totalorder %s946_s20, %s946_s20 }
  0x1e   :  { %p953_p0 = por %p952_p13, %p951_p12 }
  0x20   :  { %p954_p1 = pnand %p953_p0, %p947_p11 }
  0x22   :  { %957 = shalt.err (!%p954_p1)
}
  0x23   :  { %26 = dma.hbm_to_vmem [thread:$0]  %s1214_s0, 512, %s1079_s24, [#allocation3], %s1034_s9, %s1034_s9, %s1035_s10  }
  0x24   :  { %s1036_s22 = smov [#allocation7]   ;;  %s958_s27 = scalar_lea.hbm %s1216_s2, 256 }
  0x25   :  { %s44_s23 = sshll.u32 %s1036_s22, 4  ;;  %p959_p2 = scmp.ne.s32.totalorder %s1216_s2, %s958_s27  ;;  %s45_s23 = int_to_ptr.vmem [resolvable:$true] %s44_s23 }
  0x26   :  { %p962_p3 = scmp.lt.u32.totalorder %s958_s27, %s1216_s2 }
  0x28   :  { %p964_p4 = pnand %p962_p3, %p959_p2 }
  0x2a   :  { %967 = shalt.err (!%p964_p4)
}
  0x2b   :  { %s968_s8 = scalar_lea.vmem %s45_s23, 256  ;;  %p973_p6 = scmp.lt.s32.totalorder %s45_s23, %s45_s23 }
  0x2c   :  { %p969_p5 = scmp.ne.s32.totalorder %s45_s23, %s968_s8  ;;  %p974_p7 = scmp.lt.s32.totalorder %s968_s8, %s968_s8 }
  0x2e   :  { %p975_p8 = por %p974_p7, %p973_p6 }
  0x30   :  { %p976_p9 = pnand %p975_p8, %p969_p5 }
  0x32   :  { %979 = shalt.err (!%p976_p9)
}
  0x33   :  { %s1037_s0 = smov 64   ;;  %s1038_s24 = smov 4  }
  0x34   :  { %50 = dma.hbm_to_vmem [thread:$0]  %s1216_s2, 256, %s45_s23, [#allocation6], %s1037_s0, %s1037_s0, %s1038_s24  }
  0x35   :  { %s1039_s13 = smov [#allocation8]   ;;  %s980_s17 = scalar_lea.hbm %s1218_s4, 512 }
  0x36   :  { %s58_s14 = sshll.u32 %s1039_s13, 4  ;;  %p981_p10 = scmp.ne.s32.totalorder %s1218_s4, %s980_s17  ;;  %s59_s14 = int_to_ptr.vmem [resolvable:$true] %s58_s14 }
  0x37   :  { %p984_p11 = scmp.lt.u32.totalorder %s980_s17, %s1218_s4 }
  0x39   :  { %p986_p12 = pnand %p984_p11, %p981_p10 }
  0x3b   :  { %989 = shalt.err (!%p986_p12)
}
  0x3c   :  { %s990_s21 = scalar_lea.vmem %s59_s14, 512  ;;  %p995_p0 = scmp.lt.s32.totalorder %s59_s14, %s59_s14 }
  0x3d   :  { %p991_p13 = scmp.ne.s32.totalorder %s59_s14, %s990_s21  ;;  %p996_p1 = scmp.lt.s32.totalorder %s990_s21, %s990_s21 }
  0x3f   :  { %p997_p2 = por %p996_p1, %p995_p0 }
  0x41   :  { %p998_p3 = pnand %p997_p2, %p991_p13 }
  0x43   :  { %1001 = shalt.err (!%p998_p3)
}
  0x44   :  { %64 = dma.hbm_to_vmem [thread:$0]  %s1218_s4, 512, %s59_s14, [#allocation9], %s1034_s9, %s1034_s9, %s1035_s10  }
  0x45   :  { %1024 = dma.done.wait [#allocation3], 512  }
  0x46   :  { %1025 = vsyncadd [#allocation3], 4294966784 }
  0x47   :  { %1026 = dma.done.wait [#allocation6], 768  }
  0x48   :  { %1027 = vsyncadd [#allocation6], 4294966528 }
  0x49   :  { %1028 = dma.done.wait [#allocation9], 512  }
  0x4a   :  { %1029 = vsyncadd [#allocation9], 4294966784  ;;  %v1040_v0 = vmov 0   ;;  %v890_v1 = vld [vmem:[#allocation8 + $0x4] ss:$8 sps:$4 sm:$0xff]   ;;  %v893_v3 = vld [vmem:[#allocation7] sm:$0xff]   ;;  %v191_v20 = vlaneseq }
  0x4b   :  { %269 = vmatprep.mubr.bf16.mxu1 %v1040_v0  ;;  %v892_v2 = vld [vmem:[#allocation8] ss:$8 sps:$4 sm:$0xff]   ;;  %237 = vmatprep.subr.bf16.mxu1 %v890_v1  ;;  %v894_v4 = vld [vmem:[#allocation8 + $0x14] ss:$8 sps:$4 sm:$0xff]   ;;  %v896_v5 = vld [vmem:[#allocation8 + $0x10] ss:$8 sps:$4 sm:$0xff]  }
  0x4c   :  { %238 = vmatpush1.bf16.msra.mxu1 %v892_v2  ;;  %822 = vmatprep.subr.bf16.mxu0 %v893_v3  ;;  %v897_v6 = vld [vmem:[#allocation7 + $0x8] sm:$0xff]   ;;  %v88_v7 = vld [vmem:[#allocation5] sm:$0xff]  ;;  %vm129_vm0 = vcmask 261120   ;;  %v82_v13 = vld [vmem:[#allocation2 + $0x10] sm:$0xff]  ;;  %v1041_v19 = vmov 0.0   ;;  %vm1042_vm1 = vmmov 0  }
  0x4d   :  { %239 = vmatprep.subr.bf16.mxu1 %v894_v4  ;;  %823 = vmatpush3.bf16.msra.mxu0 %v893_v3  ;;  %v89_v8 = vld [vmem:[#allocation5 + $0x8] sm:$0xff]  ;;  %v80_v9 = vld [vmem:[#allocation2] sm:$0xff]  ;;  %v83_v14 = vld [vmem:[#allocation2 + $0x18] sm:$0xff]  ;;  %v192_v21 = vshrl.u32 %v191_v20, 7  ;;  %vm542_vm2 = vcmask 1043456   ;;  %vm498_vm3 = vcmask 64512  }
  0x4e   :  { %v81_v10 = vld [vmem:[#allocation2 + $0x8] sm:$0xff]  ;;  %824 = vmatprep.subr.bf16.mxu0 %v897_v6  ;;  %v788_v11 = vpack.c.bf16 %v89_v8, %v88_v7  ;;  %v787_v15 = vpack.c.bf16 %v83_v14, %v82_v13  ;;  %v90_v16 = vld [vmem:[#allocation5 + $0x10] sm:$0xff]  ;;  %v91_v17 = vld [vmem:[#allocation5 + $0x18] sm:$0xff] }
  0x4f   :  { %v786_v12 = vpack.c.bf16 %v81_v10, %v80_v9  ;;  %v789_v18 = vpack.c.bf16 %v91_v17, %v90_v16  ;;  %v193_v22 = vsub.s32 0, %v192_v21  ;;  %v189_v23 = vld [vmem:[%s1219_s5] sm:$0x3]  ;;  %v197_v34 = vsub.s32 1, %v192_v21 }
  0x50   :  { %240 = vmatpush1.bf16.msra.mxu1 %v896_v5  ;;  %v755_v28 = vld [vmem:[%s1217_s3] ss:$0 sm:$0xff]  ;;  %s1043_s3 = smov [#allocation10]  }
  0x51   :  { %826 = vmatprep.mubr.msk.bf16.mxu0 %vm129_vm0, %v786_v12  ;;  %825 = vmatpush3.bf16.msra.mxu0 %v897_v6  ;;  %v194_v24 = vrot.slane %v189_v23, %v193_v22  ;;  %v198_v40 = vrot.slane %v189_v23, %v197_v34  ;;  %s741_s5 = sshll.u32 %s1043_s3, 4  ;;  %s742_s5 = int_to_ptr.vmem [resolvable:$true] %s741_s5 }
  0x52   :  { %830 = vmatprep.subr.bf16.mxu0 %v1041_v19  ;;  %842 = vmatprep.subr.bf16.mxu1 %v1041_v19  ;;  %s1002_s27 = scalar_lea.vmem %s742_s5, 512  ;;  %p1007_p5 = scmp.lt.s32.totalorder %s742_s5, %s742_s5 }
  0x53   :  { %768 = vmatmul.mubr.msk.bf16.vlgmr.msra.gmra.mrb[0].mxu1 %vm129_vm0, %v788_v11  ;;  %p1003_p4 = scmp.ne.s32.totalorder %s742_s5, %s1002_s27  ;;  %p1008_p6 = scmp.lt.s32.totalorder %s1002_s27, %s1002_s27 }
  0x54   :  { %279 = vmatprep.mubr.bf16.mxu1 %v1040_v0  ;;  %827 = vmatmul.mubr.msk.bf16.vlgmr.msra.gmra.mrb[0].mxu0 %vm129_vm0, %v787_v15 }
  0x55   :  { %832 = vmatprep.mubr.msk.bf16.mxu0 %vm1042_vm1, %v1041_v19  ;;  %p1009_p7 = por %p1008_p6, %p1007_p5 }
  0x57   :  { %p1010_p8 = pnand %p1009_p7, %p1003_p4 }
  0x5b   :  { %769 = vmatmul.mubr.msk.bf16.gmra.mrb[4].mxu1 %vm129_vm0, %v789_v18 }
  0x5c   :  { %844 = vmatprep.mubr.msk.bf16.mxu1 %vm1042_vm1, %v1041_v19 }
 0x126   :  { %v271_v25 = vpop.f32.mrb[0].mxu1 }
 0x127   :  { %v272_v26 = vadd.f32 %v271_v25, %v194_v24  ;;  %v273_v27 = vpop.f32.mrb[1].mxu1  ;;  %v828_v30 = vpop.f32.mrb[0].mxu0 }
 0x128   :  { %v275_v29 = vpop.f32.mrb[2].mxu1  ;;  %v170_v33 = vpop.f32.mrb[1].mxu0  ;;  %v179_v45 = vadd.f32 %v828_v30, %v755_v28  ;;  %v274_v52 = vadd.f32 %v273_v27, %v198_v40 }
 0x129   :  { %v794_v31 = vpack.c.bf16 %v272_v26, %v272_v26  ;;  %v277_v32 = vpop.f32.mrb[3].mxu1  ;;  %v171_v35 = vadd.f32 %v755_v28, %v170_v33  ;;  %v829_v36 = vpop.f32.mrb[2].mxu0  ;;  %v276_v39 = vadd.f32 %v275_v29, %v194_v24 }
 0x12a   :  { %v173_v37 = vpop.f32.mrb[3].mxu0  ;;  %v292_v55 = vmul.f32 0.17677669, %v179_v45  ;;  %v798_v60 = vpack.c.bf16 %v274_v52, %v274_v52  ;;  %v182_v63 = vadd.f32 %v829_v36, %v755_v28  ;;  %v278_v3 = vadd.f32 %v277_v32, %v198_v40 }
 0x12b   :  { %831 = vmatpush3.bf16.xpose.msra.mxu0 %v794_v31  ;;  %v290_v38 = vmul.f32 0.17677669, %v171_v35  ;;  %v174_v46 = vadd.f32 %v755_v28, %v173_v37  ;;  %v795_v49 = vpack.c.bf16 %v276_v39, %v276_v39 }
 0x12c   :  { %836 = vmatprep.subr.bf16.mxu0 %v1041_v19  ;;  %v792_v62 = vpack.c.bf16 %v292_v55, %v292_v55  ;;  %v544_v2 = vsel %vm542_vm2, %v798_v60, 0  ;;  %v293_v4 = vmul.f32 0.17677669, %v182_v63  ;;  %v799_v5 = vpack.c.bf16 %v278_v3, %v278_v3 }
 0x12d   :  { %v790_v41 = vpack.c.bf16 %v290_v38, %v290_v38  ;;  %v291_v56 = vmul.f32 0.17677669, %v174_v46 }
 0x12e   :  { %v281_v42 = vpop.f32.mrb[4].mxu1  ;;  %v793_v6 = vpack.c.bf16 %v293_v4, %v293_v4  ;;  %v590_v7 = vsel %vm542_vm2, %v799_v5, 0 }
 0x12f   :  { %v282_v43 = vadd.f32 %v281_v42, %v194_v24  ;;  %v283_v44 = vpop.f32.mrb[5].mxu1  ;;  %v791_v0 = vpack.c.bf16 %v291_v56, %v291_v56 }
 0x130   :  { %v284_v47 = vadd.f32 %v283_v44, %v198_v40  ;;  %v285_v48 = vpop.f32.mrb[6].mxu1 }
 0x131   :  { %v796_v50 = vpack.c.bf16 %v282_v43, %v282_v43  ;;  %v287_v51 = vpop.f32.mrb[7].mxu1  ;;  %v286_v59 = vadd.f32 %v285_v48, %v194_v24 }
 0x132   :  { %v800_v53 = vpack.c.bf16 %v284_v47, %v284_v47  ;;  %v288_v54 = vadd.f32 %v287_v51, %v198_v40  ;;  %833 = vmatmul.mubr.bf16.vlgmr.msra.gmra.mrb[4].mxu0 %v790_v41 }
 0x133   :  { %837 = vmatpush3.bf16.xpose.msra.mxu0 %v795_v49  ;;  %843 = vmatpush3.bf16.xpose.msra.mxu1 %v796_v50  ;;  %v797_v1 = vpack.c.bf16 %v286_v59, %v286_v59 }
 0x134   :  { %v1161_v57 = vsel %vm542_vm2, %v800_v53, 0  ;;  %v801_v58 = vpack.c.bf16 %v288_v54, %v288_v54  ;;  %838 = vmatprep.mubr.msk.bf16.mxu0 %vm1042_vm1, %v1041_v19  ;;  %848 = vmatprep.subr.bf16.mxu0 %v1041_v19 }
 0x135   :  { %854 = vmatprep.subr.bf16.mxu1 %v1041_v19 }
 0x136   :  { %v1168_v61 = vsel %vm542_vm2, %v801_v58, 0 }
 0x13a   :  { %839 = vmatmul.mubr.bf16.vlgmr.msra.gmra.mrb[8].mxu0 %v791_v0  ;;  %845 = vmatmul.mubr.bf16.vlgmr.msra.gmra.mrb[8].mxu1 %v792_v62 }
 0x13b   :  { %849 = vmatpush3.bf16.xpose.msra.mxu0 %v797_v1  ;;  %855 = vmatpush3.bf16.msra.mxu1 %v544_v2 }
 0x13c   :  { %850 = vmatprep.mubr.msk.bf16.mxu0 %vm1042_vm1, %v1041_v19  ;;  %860 = vmatprep.subr.bf16.mxu0 %v1041_v19 }
 0x13d   :  { %856 = vmatprep.mubr.msk.bf16.mxu1 %vm1042_vm1, %v1041_v19  ;;  %866 = vmatprep.subr.bf16.mxu1 %v1041_v19 }
 0x142   :  { %851 = vmatmul.mubr.bf16.vlgmr.msra.gmra.mrb[12].mxu0 %v793_v6 }
 0x143   :  { %861 = vmatpush3.bf16.msra.mxu0 %v590_v7  ;;  %862 = vmatprep.mubr.msk.bf16.mxu0 %vm1042_vm1, %v1041_v19 }
 0x144   :  { %872 = vmatprep.subr.bf16.mxu0 %v1041_v19 }
 0x205   :  { %v372_v8 = vpop.f32.mrb[4].mxu0 }
 0x206   :  { %v499_v9 = vsel %vm498_vm3, %v372_v8, -inf  ;;  %v834_v10 = vpop.f32.mrb[5].mxu0 }
 0x207   :  { %500 = vmax.xlane.f32.xlu0 %v499_v9  ;;  %v375_v11 = vpop.f32.mrb[6].mxu0 }
 0x208   :  { %v835_v12 = vpop.f32.mrb[7].mxu0 }
 0x20d   :  { %v412_v13 = vpop.f32.mrb[8].mxu0  ;;  %v452_v14 = vpop.f32.mrb[8].mxu1 }
 0x20e   :  { %v840_v15 = vpop.f32.mrb[9].mxu0  ;;  %v846_v16 = vpop.f32.mrb[9].mxu1  ;;  %v505_v17 = vsel %vm498_vm3, %v452_v14, -inf  ;;  %v502_v18 = vsel %vm498_vm3, %v412_v13, -inf }
 0x20f   :  { %506 = vmax.xlane.f32.xlu1 %v505_v17  ;;  %v455_v20 = vpop.f32.mrb[10].mxu1  ;;  %503 = vmax.xlane.f32.xlu0 %v502_v18  ;;  %v415_v21 = vpop.f32.mrb[10].mxu0 }
 0x210   :  { %v841_v22 = vpop.f32.mrb[11].mxu0  ;;  %v847_v23 = vpop.f32.mrb[11].mxu1 }
 0x215   :  { %v492_v24 = vpop.f32.mrb[12].mxu0 }
 0x216   :  { %v852_v25 = vpop.f32.mrb[13].mxu0  ;;  %v508_v26 = vsel %vm498_vm3, %v492_v24, -inf }
 0x217   :  { %509 = vmax.xlane.f32.xlu1 %v508_v26  ;;  %v495_v27 = vpop.f32.mrb[14].mxu0 }
 0x218   :  { %v853_v28 = vpop.f32.mrb[15].mxu0 }
 0x294   :  { %v501_v29 = vpop.xlane.xlu0 %500 }
 0x295   :  { %v511_v30 = vsub.f32 %v372_v8, %v501_v29 }
 0x297   :  { %v515_v31 = vmul.f32 1.442695, %v511_v30 }
 0x299   :  { %898 = vpow2.f32 %v515_v31 }
 0x29c   :  { %v507_v32 = vpop.xlane.xlu1 %506  ;;  %v504_v33 = vpop.xlane.xlu0 %503 }
 0x29d   :  { %v513_v34 = vsub.f32 %v452_v14, %v507_v32  ;;  %v512_v35 = vsub.f32 %v412_v13, %v504_v33 }
 0x29f   :  { %v519_v36 = vmul.f32 1.442695, %v513_v34  ;;  %v517_v37 = vmul.f32 1.442695, %v512_v35 }
 0x2a1   :  { %900 = vpow2.f32 %v519_v36 }
 0x2a2   :  { %902 = vpow2.f32 %v517_v37 }
 0x2a3   :  { %v899_v38 = vpop.eup %898 }
 0x2a4   :  { %v510_v39 = vpop.xlane.xlu1 %509  ;;  %v523_v40 = vsel %vm498_vm3, %v899_v38, 0.0  ;;  %v535_v41 = vpack.c.bf16 %v899_v38, %v899_v38 }
 0x2a5   :  { %v514_v42 = vsub.f32 %v492_v24, %v510_v39  ;;  %524 = vadd.xlane.f32.xlu0 %v523_v40 }
 0x2a6   :  { %857 = vmatmul.mubr.msk.bf16.vlgmr.msra.gmra.mrb[12].mxu1 %vm498_vm3, %v535_v41 }
 0x2a7   :  { %v521_v43 = vmul.f32 1.442695, %v514_v42  ;;  %867 = vmatpush3.bf16.msra.mxu1 %v1161_v57  ;;  %868 = vmatprep.mubr.msk.bf16.mxu1 %vm1042_vm1, %v1041_v19 }
 0x2a9   :  { %904 = vpow2.f32 %v521_v43 }
 0x2ab   :  { %v901_v44 = vpop.eup %900 }
 0x2ac   :  { %v903_v45 = vpop.eup %902  ;;  %v529_v46 = vsel %vm498_vm3, %v901_v44, 0.0  ;;  %v537_v47 = vpack.c.bf16 %v901_v44, %v901_v44 }
 0x2ad   :  { %530 = vadd.xlane.f32.xlu0 %v529_v46  ;;  %v526_v48 = vsel %vm498_vm3, %v903_v45, 0.0  ;;  %v536_v49 = vpack.c.bf16 %v903_v45, %v903_v45 }
 0x2ae   :  { %527 = vadd.xlane.f32.xlu1 %v526_v48  ;;  %869 = vmatmul.mubr.msk.bf16.vlgmr.msra.gmra.mrb[16].mxu1 %vm498_vm3, %v537_v47 }
 0x2af   :  { %863 = vmatmul.mubr.msk.bf16.vlgmr.msra.gmra.mrb[16].mxu0 %vm498_vm3, %v536_v49 }
 0x2b0   :  { %873 = vmatpush3.bf16.msra.mxu0 %v1168_v61  ;;  %874 = vmatprep.mubr.msk.bf16.mxu0 %vm1042_vm1, %v1041_v19 }
 0x2b3   :  { %v905_v50 = vpop.eup %904 }
 0x2b4   :  { %v532_v51 = vsel %vm498_vm3, %v905_v50, 0.0  ;;  %v538_v52 = vpack.c.bf16 %v905_v50, %v905_v50 }
 0x2b5   :  { %533 = vadd.xlane.f32.xlu1 %v532_v51 }
 0x2b7   :  { %875 = vmatmul.mubr.msk.bf16.vlgmr.msra.gmra.mrb[20].mxu0 %vm498_vm3, %v538_v52 }
 0x332   :  { %v525_v53 = vpop.xlane.xlu0 %524 }
 0x333   :  { %906 = vrcp.f32 %v525_v53 }
 0x33a   :  { %v531_v54 = vpop.xlane.xlu0 %530 }
 0x33b   :  { %v528_v55 = vpop.xlane.xlu1 %527  ;;  %908 = vrcp.f32 %v531_v54 }
 0x33c   :  { %910 = vrcp.f32 %v528_v55 }
 0x33d   :  { %v907_v56 = vpop.eup %906 }
 0x342   :  { %v534_v61 = vpop.xlane.xlu1 %533 }
 0x343   :  { %912 = vrcp.f32 %v534_v61 }
 0x345   :  { %v909_v62 = vpop.eup %908 }
 0x346   :  { %v911_v0 = vpop.eup %910 }
 0x34d   :  { %v913_v10 = vpop.eup %912 }
 0x379   :  { %v580_v57 = vpop.f32.mrb[12].mxu1 }
 0x37a   :  { %v728_v58 = vmul.f32 %v907_v56, %v580_v57  ;;  %v858_v59 = vpop.f32.mrb[13].mxu1 }
 0x37b   :  { %v583_v60 = vpop.f32.mrb[14].mxu1 }
 0x37c   :  { %732 = vst [vmem:[#allocation10] sm:$0xff] %v728_v58  ;;  %v859_v19 = vpop.f32.mrb[15].mxu1 }
 0x381   :  { %v672_v63 = vpop.f32.mrb[16].mxu1 }
 0x382   :  { %v626_v1 = vpop.f32.mrb[16].mxu0  ;;  %v730_v2 = vmul.f32 %v909_v62, %v672_v63  ;;  %v870_v3 = vpop.f32.mrb[17].mxu1 }
 0x383   :  { %v729_v4 = vmul.f32 %v911_v0, %v626_v1  ;;  %v864_v5 = vpop.f32.mrb[17].mxu0  ;;  %v675_v6 = vpop.f32.mrb[18].mxu1 }
 0x384   :  { %734 = vst [vmem:[#allocation10 + $0x10] sm:$0xff] %v730_v2  ;;  %v629_v7 = vpop.f32.mrb[18].mxu0  ;;  %v871_v8 = vpop.f32.mrb[19].mxu1 }
 0x385   :  { %733 = vst [vmem:[#allocation10 + $0x8] sm:$0xff] %v729_v4  ;;  %v865_v9 = vpop.f32.mrb[19].mxu0 }
 0x38a   :  { %v718_v11 = vpop.f32.mrb[20].mxu0 }
 0x38b   :  { %v731_v12 = vmul.f32 %v913_v10, %v718_v11  ;;  %v876_v13 = vpop.f32.mrb[21].mxu0 }
 0x38c   :  { %v721_v14 = vpop.f32.mrb[22].mxu0 }
 0x38d   :  { %735 = vst [vmem:[#allocation10 + $0x18] sm:$0xff] %v731_v12  ;;  %v877_v15 = vpop.f32.mrb[23].mxu0 }
 0x38e   :  { %1013 = shalt.err (!%p1010_p8)
}
 0x38f   :  { %s1014_s30 = scalar_lea.hbm %s1220_s6, 512 }
 0x390   :  { %p1015_p9 = scmp.ne.s32.totalorder %s1220_s6, %s1014_s30  ;;  %p1018_p10 = scmp.lt.u32.totalorder %s1014_s30, %s1220_s6 }
 0x392   :  { %p1020_p11 = pnand %p1018_p10, %p1015_p9 }
 0x394   :  { %1023 = shalt.err (!%p1020_p11)
}
 0x395   :  { %747 = dma.vmem_to_hbm [thread:$0]  %s742_s5, 512, %s1220_s6, [#allocation4], %s1034_s9, %s1034_s9, %s1035_s10  }
 0x396   :  { %1030 = dma.done.wait [#allocation4], 512  }
 0x397   :  { %1031 = vsyncadd [#allocation4], 4294966784 }
 0x398   :  { %751 = vsyncpa [#allocation3], 1 }
 0x399   :  { %752 = vsyncpa [#allocation6], 1 }
 0x39a   :  { %753 = vsyncpa [#allocation9], 1 }
 0x39b   :  { %754 = vsyncpa [#allocation4], 1 }

</bundles_post_ra>
